<compile_context>
chip_gen: v7x
topology: tpu7x:2x2x1
jax: 0.10.0
libtpu: 0.0.40
codegen_flags: <defaults>
</compile_context>

<pallas_src>
import functools

import jax
import jax.numpy as jnp
from jax.experimental import pallas as pl
from jax.experimental.pallas import tpu as pltpu


def bert_classifier_kernel(vlen_ref,        # VMEM [TB, 1]     int32
                           emb_ref,         # VMEM [TB, TS, H] bf16
                           wp_ref, bp_ref,  # VMEM [H, H] bf16, [1, H] f32
                           wc_ref, bc_ref,  # VMEM [H, Cp] bf16, [1, Cp] f32
                           out_ref,         # VMEM [TB, Cp] f32
                           acc_ref,         # VMEM scratch [TB, H] f32
                           *, seq_len):
    s_idx = pl.program_id(1)
    n_s = pl.num_programs(1)
    TB, TS, _ = emb_ref.shape

    @pl.when(s_idx == 0)
    def _init():
        acc_ref[...] = jnp.zeros_like(acc_ref)

    # --- gen_attention_mask for this tile, fully vectorized -----------------
    # mask[b, 0, s] = 1.0 iff (tile_offset + s) < valid_length[b]
    pos = s_idx * TS + jax.lax.broadcasted_iota(jnp.int32, (TB, 1, TS), 2)
    vlen = vlen_ref[...]                                       # [TB, 1] int32
    mask = (pos < vlen[:, :, None]).astype(jnp.bfloat16)       # [TB, 1, TS]

    # --- masked partial sum over the sequence tile, on the MXU ---------------
    # bf16 x bf16 batched contraction with f32 accumulation; per batch row it
    # is a (1, TS) @ (TS, H) matmul, so the reduction never touches the VPU
    # and no f32 [TB, TS, H] temporaries are materialized.
    part = jnp.einsum("bqs,bsh->bqh", mask, emb_ref[...],
                      preferred_element_type=jnp.float32)      # [TB, 1, H]
    acc_ref[...] += part[:, 0, :]

    # --- finalize on the last sequence tile: pooler dense+tanh, classifier ---
    @pl.when(s_idx == n_s - 1)
    def _finalize():
        # denom = clip(valid_length, 1, S): # of positions actually summed.
        denom = jnp.clip(vlen, 1, seq_len).astype(jnp.float32)     # [TB, 1]
        pooled = acc_ref[...] * pl.reciprocal(denom, approx=True)  # [TB, H]
        pooler = jnp.tanh(
            jnp.dot(pooled.astype(jnp.bfloat16), wp_ref[...],
                    preferred_element_type=jnp.float32) + bp_ref[...])
        # dropout: eval mode -> identity
        out_ref[...] = (
            jnp.dot(pooler.astype(jnp.bfloat16), wc_ref[...],
                    preferred_element_type=jnp.float32) + bc_ref[...])


def bert_classifier_forward(token_ids, valid_length, segment_ids, params,
                            *, tb=8, ts=512):
    """Embedding gather (JAX glue) + fused mask/pool/dense/classifier kernel."""
    tok_emb = params["tok_emb"]          # [V, H]
    seg_emb = params["seg_emb"]          # [2, H]
    wp, bp = params["wp"], params["bp"]  # [H, H], [1, H]   (input-major)
    wc, bc = params["wc"], params["bc"]  # [H, C], [1, C]   (input-major)

    B, S = token_ids.shape
    H = tok_emb.shape[1]
    C = wc.shape[1]

    # Embedding lookup stays in plain JAX glue; activations are streamed as
    # bf16 to halve HBM bytes on the dominant [B, S, H] read.
    # TODO(synk): fuse this gather into the kernel (HBM-resident tables +
    # in-kernel row DMA) to remove the HBM write + re-read of emb.
    emb = (tok_emb[token_ids] + seg_emb[segment_ids]).astype(jnp.bfloat16)

    tb = min(tb, B)
    ts = min(ts, S)
    # Pad ONLY the seq dim and only when S is not tile-aligned: the mask zeros
    # those positions, but 0 * garbage(NaN) would poison the MXU accumulation.
    # Demo shapes are aligned -> no copy.  Batch dim is never padded (partial
    # edge blocks only affect output rows that are sliced off).
    if S % ts:
        s_pad = pl.cdiv(S, ts) * ts
        emb = jnp.pad(emb, ((0, 0), (0, s_pad - S), (0, 0)))

    # valid_length as a per-row column; clamp to [0, S] so padded positions
    # never contribute (handles vlen > S the same way the PyTorch [:v] does).
    vlen = jnp.clip(valid_length.astype(jnp.int32), 0, S).reshape(B, 1)

    # Pad classifier output dim to 128 lanes (lane-dense unmasked stores,
    # full-width MXU tile); weights go to the MXU as bf16.
    c_pad = pl.cdiv(C, 128) * 128
    wp_bf = wp.astype(jnp.bfloat16)
    wc_bf = jnp.pad(wc, ((0, 0), (0, c_pad - C))).astype(jnp.bfloat16)
    bp_f = bp.astype(jnp.float32)
    bc_f = jnp.pad(bc, ((0, 0), (0, c_pad - C))).astype(jnp.float32)

    grid = (pl.cdiv(B, tb), emb.shape[1] // ts)

    # Weights never change across the grid -> a single pipeline buffer.
    resident = dict(pipeline_mode=pl.Buffered(1))
    grid_spec = pltpu.PrefetchScalarGridSpec(
        num_scalar_prefetch=0,
        grid=grid,
        in_specs=[
            pl.BlockSpec((tb, 1), lambda b, s: (b, 0)),         # valid_length
            pl.BlockSpec((tb, ts, H), lambda b, s: (b, s, 0)),  # activations
            pl.BlockSpec((H, H), lambda b, s: (0, 0), **resident),      # wp
            pl.BlockSpec((1, H), lambda b, s: (0, 0), **resident),      # bp
            pl.BlockSpec((H, c_pad), lambda b, s: (0, 0), **resident),  # wc
            pl.BlockSpec((1, c_pad), lambda b, s: (0, 0), **resident),  # bc
        ],
        out_specs=pl.BlockSpec((tb, c_pad), lambda b, s: (b, 0)),
        scratch_shapes=[pltpu.VMEM((tb, H), jnp.float32)],
    )

    # VMEM budget: double-buffered streamed tiles + single-buffered resident
    # weights + accumulator, with 2x headroom, capped at v7x's 64 MiB.
    est = (2 * tb * ts * H * 2             # emb tiles, bf16, 2 buffers
           + 2 * 8 * 128 * 4               # vlen tiles (tile-padded), 2 bufs
           + H * H * 2 + H * c_pad * 2     # wp, wc, bf16, 1 buffer each
           + 8 * (H + c_pad) * 4           # bp, bc (tile-padded), 1 buffer
           + 2 * tb * c_pad * 4            # out tiles, 2 buffers
           + tb * H * 4)                   # f32 accumulator scratch
    vmem_limit = int(min(max(2 * est, 32 * 1024 * 1024), 64 * 1024 * 1024))

    logits_p = pl.pallas_call(
        functools.partial(bert_classifier_kernel, seq_len=S),
        out_shape=jax.ShapeDtypeStruct((B, c_pad), jnp.float32),
        grid_spec=grid_spec,
        compiler_params=pltpu.CompilerParams(
            # batch tiles are independent (shard across megacore TCs); the
            # sequence axis carries the VMEM accumulator -> "arbitrary", last.
            dimension_semantics=("parallel", "arbitrary"),
            vmem_limit_bytes=vmem_limit,
        ),
    )(vlen, emb, wp_bf, bp_f, wc_bf, bc_f)

    return logits_p[:, :C]


def reference_forward(token_ids, valid_length, segment_ids, params):
    """Pure-JAX reference (same bf16 rounding of the streamed activations)."""
    emb = (params["tok_emb"][token_ids] + params["seg_emb"][segment_ids]
           ).astype(jnp.bfloat16).astype(jnp.float32)
    B, S, H = emb.shape
    vlen = jnp.clip(valid_length.astype(jnp.int32), 0, S)
    mask = (jnp.arange(S, dtype=jnp.int32)[None, :] < vlen[:, None]
            ).astype(jnp.float32)
    denom = jnp.clip(vlen, 1, S).astype(jnp.float32)[:, None]
    pooled = jnp.sum(emb * mask[:, :, None], axis=1) / denom
    hi = jax.lax.Precision.HIGHEST
    pooler = jnp.tanh(jnp.dot(pooled, params["wp"], precision=hi)
                      + params["bp"])
    return jnp.dot(pooler, params["wc"], precision=hi) + params["bc"]


def init_params(key, vocab_size, hidden_size, num_classes):
    k1, k2, k3, k4, k5, k6 = jax.random.split(key, 6)
    return {
        "tok_emb": 0.5 * jax.random.normal(k1, (vocab_size, hidden_size),
                                           jnp.float32),
        "seg_emb": 0.5 * jax.random.normal(k2, (2, hidden_size), jnp.float32),
        # pooler dense (Linear hidden -> hidden), stored input-major [H, H]
        "wp": 0.05 * jax.random.normal(k3, (hidden_size, hidden_size),
                                       jnp.float32),
        "bp": 0.01 * jax.random.normal(k4, (1, hidden_size), jnp.float32),
        # classifier (Linear hidden -> num_classes), stored input-major [H, C]
        "wc": 0.05 * jax.random.normal(k5, (hidden_size, num_classes),
                                       jnp.float32),
        "bc": 0.01 * jax.random.normal(k6, (1, num_classes), jnp.float32),
    }


if __name__ == "__main__":
    # Small but tile-aligned shapes: hidden a multiple of 128, seq tile-aligned
    # and B=16 so the "parallel" batch axis has 2 blocks (both v7x TCs busy).
    B, S, H, C, V = 16, 256, 128, 32, 1000

    key = jax.random.PRNGKey(0)
    kp, kt, ks = jax.random.split(key, 3)

    params = init_params(kp, vocab_size=V, hidden_size=H, num_classes=C)

    token_ids = jax.random.randint(kt, (B, S), 0, V, dtype=jnp.int32)
    segment_ids = jax.random.randint(ks, (B, S), 0, 2, dtype=jnp.int32)
    # per-example lengths; includes 0, 1 and one entry > S (clamp paths)
    valid_length = jnp.array([256, 200, 128, 77, 33, 9, 1, 300,
                              0, 64, 256, 5, 150, 222, 18, 101],
                             dtype=jnp.int32)

    logits = bert_classifier_forward(token_ids, valid_length, segment_ids,
                                     params)
    jax.block_until_ready(logits)

    assert logits.shape == (B, C)
    assert logits.dtype == jnp.float32

    ref = reference_forward(token_ids, valid_length, segment_ids, params)
    assert jnp.allclose(logits, ref, atol=2e-2, rtol=2e-2), (
        "kernel output mismatch vs reference")

    print("KERNEL_OK")
</pallas_src>

<mosaic_0001>
module attributes {stable_mosaic.version = 11 : i64} {
  func.func @bert_classifier_kernel(%arg0: i32, %arg1: i32, %arg2: memref<8x1xi32, #tpu.memory_space<vmem>>, %arg3: memref<8x256x128xbf16, #tpu.memory_space<vmem>>, %arg4: memref<128x128xbf16, #tpu.memory_space<vmem>>, %arg5: memref<1x128xf32, #tpu.memory_space<vmem>>, %arg6: memref<128x128xbf16, #tpu.memory_space<vmem>>, %arg7: memref<1x128xf32, #tpu.memory_space<vmem>>, %arg8: memref<8x128xf32, #tpu.memory_space<vmem>>, %arg9: memref<8x128xf32, #tpu.memory_space<vmem>>) attributes {dimension_semantics = [#tpu.dimension_semantics<parallel>, #tpu.dimension_semantics<arbitrary>], iteration_bounds = array<i64: 2, 1>, scalar_prefetch = 0 : i64, scratch_operands = 1 : i64, tpu.core_type = #tpu.core_type<tc>, window_params = [{transform_indices = @transform_0, window_bounds = array<i64: 8, 1>}, {transform_indices = @transform_1, window_bounds = array<i64: 8, 256, 128>}, {pipeline_mode = #tpu.pipeline_mode<synchronous>, transform_indices = @transform_2, window_bounds = array<i64: 128, 128>}, {pipeline_mode = #tpu.pipeline_mode<synchronous>, transform_indices = @transform_3, window_bounds = array<i64: 1, 128>}, {pipeline_mode = #tpu.pipeline_mode<synchronous>, transform_indices = @transform_4, window_bounds = array<i64: 128, 128>}, {pipeline_mode = #tpu.pipeline_mode<synchronous>, transform_indices = @transform_5, window_bounds = array<i64: 1, 128>}, {transform_indices = @transform_6, window_bounds = array<i64: 8, 128>}]} {
    %c0_i32 = arith.constant 0 : i32
    %0 = arith.cmpi eq, %arg1, %c0_i32 : i32
    %1 = arith.extui %0 : i1 to i32
    %c0_i32_0 = arith.constant 0 : i32
    %2 = arith.cmpi ne, %1, %c0_i32_0 : i32
    scf.if %2 {
      %cst_11 = arith.constant 0.000000e+00 : f32
      %23 = vector.broadcast %cst_11 : f32 to vector<8x128xf32>
      %c0_12 = arith.constant 0 : index
      %c0_13 = arith.constant 0 : index
      %24 = vector.load %arg9[%c0_12, %c0_13] : memref<8x128xf32, #tpu.memory_space<vmem>>, vector<8x128xf32>
      tpu.vector_store %arg9[%c0_12, %c0_13], %23 {strides = array<i32>} : memref<8x128xf32, #tpu.memory_space<vmem>>, vector<8x128xf32>,
    } else {
    }
    %c256_i32 = arith.constant 256 : i32
    %3 = arith.muli %arg1, %c256_i32 : i32
    %4 = tpu.iota {dimensions = array<i32: 2>} : vector<8x1x256xi32>
    %5 = vector.broadcast %3 : i32 to vector<8x1x256xi32>
    %6 = arith.addi %5, %4 : vector<8x1x256xi32>
    %c0 = arith.constant 0 : index
    %c0_1 = arith.constant 0 : index
    %7 = vector.load %arg2[%c0, %c0_1] : memref<8x1xi32, #tpu.memory_space<vmem>>, vector<8x1xi32>
    %8 = vector.shape_cast %7 : vector<8x1xi32> to vector<8x1x1xi32>
    %9 = vector.broadcast %8 : vector<8x1x1xi32> to vector<8x1x256xi32>
    %10 = arith.cmpi slt, %6, %9 : vector<8x1x256xi32>
    %11 = arith.extui %10 : vector<8x1x256xi1> to vector<8x1x256xi32>
    %12 = arith.sitofp %11 : vector<8x1x256xi32> to vector<8x1x256xf32>
    %13 = arith.truncf %12 : vector<8x1x256xf32> to vector<8x1x256xbf16>
    %c0_2 = arith.constant 0 : index
    %c0_3 = arith.constant 0 : index
    %c0_4 = arith.constant 0 : index
    %14 = vector.load %arg3[%c0_2, %c0_3, %c0_4] : memref<8x256x128xbf16, #tpu.memory_space<vmem>>, vector<8x256x128xbf16>
    "tpu.trace_start"() <{level = 10 : i32, message = "bqs,bsh->bqh"}> : () -> ()
    %cst = arith.constant dense<0.000000e+00> : vector<8x1x128xf32>
    %15 = tpu.matmul %13, %14, %cst {dimension_numbers = #tpu.dot_dimension_numbers<[2], [1], [1], [2], [0, 0, 0, 1, 1, 2], [0], [0]>} : vector<8x1x256xbf16>, vector<8x256x128xbf16>, vector<8x1x128xf32> -> vector<8x1x128xf32>
    "tpu.trace_stop"() : () -> ()
    %c0_5 = arith.constant 0 : index
    %c0_6 = arith.constant 0 : index
    %16 = vector.load %arg9[%c0_5, %c0_6] : memref<8x128xf32, #tpu.memory_space<vmem>>, vector<8x128xf32>
    %17 = vector.shape_cast %15 : vector<8x1x128xf32> to vector<8x128xf32>
    %18 = arith.addf %16, %17 : vector<8x128xf32>
    %c0_7 = arith.constant 0 : index
    %c0_8 = arith.constant 0 : index
    %19 = vector.load %arg9[%c0_7, %c0_8] : memref<8x128xf32, #tpu.memory_space<vmem>>, vector<8x128xf32>
    tpu.vector_store %arg9[%c0_7, %c0_8], %18 {strides = array<i32>} : memref<8x128xf32, #tpu.memory_space<vmem>>, vector<8x128xf32>,
    %c0_i32_9 = arith.constant 0 : i32
    %20 = arith.cmpi eq, %arg1, %c0_i32_9 : i32
    %21 = arith.extui %20 : i1 to i32
    %c0_i32_10 = arith.constant 0 : i32
    %22 = arith.cmpi ne, %21, %c0_i32_10 : i32
    scf.if %22 {
      %c1_i32 = arith.constant 1 : i32
      %c256_i32_11 = arith.constant 256 : i32
      %23 = vector.broadcast %c1_i32 : i32 to vector<8x1xi32>
      %24 = arith.maxsi %23, %7 : vector<8x1xi32>
      %25 = vector.broadcast %c256_i32_11 : i32 to vector<8x1xi32>
      %26 = arith.minsi %25, %24 : vector<8x1xi32>
      %27 = arith.sitofp %26 : vector<8x1xi32> to vector<8x1xf32>
      %c0_12 = arith.constant 0 : index
      %c0_13 = arith.constant 0 : index
      %28 = vector.load %arg9[%c0_12, %c0_13] : memref<8x128xf32, #tpu.memory_space<vmem>>, vector<8x128xf32>
      %29 = tpu.reciprocal %27 {approx = true} : vector<8x1xf32> -> vector<8x1xf32>
      %30 = vector.broadcast %29 : vector<8x1xf32> to vector<8x128xf32>
      %31 = arith.mulf %28, %30 : vector<8x128xf32>
      %32 = arith.truncf %31 : vector<8x128xf32> to vector<8x128xbf16>
      %c0_14 = arith.constant 0 : index
      %c0_15 = arith.constant 0 : index
      %33 = vector.load %arg4[%c0_14, %c0_15] : memref<128x128xbf16, #tpu.memory_space<vmem>>, vector<128x128xbf16>
      %cst_16 = arith.constant dense<0.000000e+00> : vector<8x128xf32>
      %34 = tpu.matmul %32, %33, %cst_16 {dimension_numbers = #tpu.dot_dimension_numbers<[1], [0], [0], [1], [0, 0, 1, 1], [], []>} : vector<8x128xbf16>, vector<128x128xbf16>, vector<8x128xf32> -> vector<8x128xf32>
      %c0_17 = arith.constant 0 : index
      %c0_18 = arith.constant 0 : index
      %35 = vector.load %arg5[%c0_17, %c0_18] : memref<1x128xf32, #tpu.memory_space<vmem>>, vector<1x128xf32>
      %36 = vector.broadcast %35 : vector<1x128xf32> to vector<8x128xf32>
      %37 = arith.addf %34, %36 : vector<8x128xf32>
      %38 = math.tanh %37 : vector<8x128xf32>
      %39 = arith.truncf %38 : vector<8x128xf32> to vector<8x128xbf16>
      %c0_19 = arith.constant 0 : index
      %c0_20 = arith.constant 0 : index
      %40 = vector.load %arg6[%c0_19, %c0_20] : memref<128x128xbf16, #tpu.memory_space<vmem>>, vector<128x128xbf16>
      %cst_21 = arith.constant dense<0.000000e+00> : vector<8x128xf32>
      %41 = tpu.matmul %39, %40, %cst_21 {dimension_numbers = #tpu.dot_dimension_numbers<[1], [0], [0], [1], [0, 0, 1, 1], [], []>} : vector<8x128xbf16>, vector<128x128xbf16>, vector<8x128xf32> -> vector<8x128xf32>
      %c0_22 = arith.constant 0 : index
      %c0_23 = arith.constant 0 : index
      %42 = vector.load %arg7[%c0_22, %c0_23] : memref<1x128xf32, #tpu.memory_space<vmem>>, vector<1x128xf32>
      %43 = vector.broadcast %42 : vector<1x128xf32> to vector<8x128xf32>
      %44 = arith.addf %41, %43 : vector<8x128xf32>
      %c0_24 = arith.constant 0 : index
      %c0_25 = arith.constant 0 : index
      %45 = vector.load %arg8[%c0_24, %c0_25] : memref<8x128xf32, #tpu.memory_space<vmem>>, vector<8x128xf32>
      tpu.vector_store %arg8[%c0_24, %c0_25], %44 {strides = array<i32>} : memref<8x128xf32, #tpu.memory_space<vmem>>, vector<8x128xf32>,
    } else {
    }
    return
  }
  func.func @transform_0(%arg0: i32, %arg1: i32) -> (i32, i32) {
    %c0_i32 = arith.constant 0 : i32
    %c0_i32_0 = arith.constant 0 : i32
    return %arg0, %c0_i32 : i32, i32
  }
  func.func @transform_1(%arg0: i32, %arg1: i32) -> (i32, i32, i32) {
    %c0_i32 = arith.constant 0 : i32
    %c0_i32_0 = arith.constant 0 : i32
    return %arg0, %arg1, %c0_i32 : i32, i32, i32
  }
  func.func @transform_2(%arg0: i32, %arg1: i32) -> (i32, i32) {
    %c0_i32 = arith.constant 0 : i32
    %c0_i32_0 = arith.constant 0 : i32
    %c0_i32_1 = arith.constant 0 : i32
    return %c0_i32, %c0_i32_0 : i32, i32
  }
  func.func @transform_3(%arg0: i32, %arg1: i32) -> (i32, i32) {
    %c0_i32 = arith.constant 0 : i32
    %c0_i32_0 = arith.constant 0 : i32
    %c0_i32_1 = arith.constant 0 : i32
    return %c0_i32, %c0_i32_0 : i32, i32
  }
  func.func @transform_4(%arg0: i32, %arg1: i32) -> (i32, i32) {
    %c0_i32 = arith.constant 0 : i32
    %c0_i32_0 = arith.constant 0 : i32
    %c0_i32_1 = arith.constant 0 : i32
    return %c0_i32, %c0_i32_0 : i32, i32
  }
  func.func @transform_5(%arg0: i32, %arg1: i32) -> (i32, i32) {
    %c0_i32 = arith.constant 0 : i32
    %c0_i32_0 = arith.constant 0 : i32
    %c0_i32_1 = arith.constant 0 : i32
    return %c0_i32, %c0_i32_0 : i32, i32
  }
  func.func @transform_6(%arg0: i32, %arg1: i32) -> (i32, i32) {
    %c0_i32 = arith.constant 0 : i32
    %c0_i32_0 = arith.constant 0 : i32
    return %arg0, %c0_i32 : i32, i32
  }
}

</mosaic_0001>

<bundles_post_ra>
// kernel: tpu_custom_call.1
= control target key start
LH: loop header
LB: loop body
LE: loop exit
PB: predicated region body
PF: predicated region fallthrough
CT: control target
= control target key end

     0   :  { %11 = vsyncpa [#allocation4], 0  ;;  %s3687_s0 = inlined_call_operand.vmem [shape: s32[16,1], index: 0, kind: input, shape index: {}]   ;;  %s3688_s1 = inlined_call_operand.hbm [shape: bf16[16,256,128], index: 1, kind: input, shape index: {}]   ;;  %s3689_s2 = inlined_call_operand.hbm [shape: bf16[128,128], index: 2, kind: input, shape index: {}]   ;;  %s3690_s3 = inlined_call_operand.vmem [shape: f32[1,128], index: 3, kind: input, shape index: {}]   ;;  %s3691_s4 = inlined_call_operand.hbm [shape: bf16[128,128], index: 4, kind: input, shape index: {}]   ;;  %s3692_s5 = inlined_call_operand.vmem [shape: f32[1,128], index: 5, kind: input, shape index: {}]   ;;  %s3693_s6 = inlined_call_operand.hbm [shape: f32[16,128], index: 6, kind: output, shape index: {}]  }
   0x1   :  { %13 = vsyncpa [#allocation4 + $0x1], 0 }
   0x2   :  { %14 = vsyncpa [#allocation7], 0 }
   0x3   :  { %15 = vsyncpa [#allocation5], 0 }
   0x4   :  { %17 = vsyncpa [#allocation5 + $0x1], 0  ;;  %s3174_s21 = smov 0   ;;  %s3176_s22 = smov 0  }
   0x5   :  { %s3178_s23 = smov 0   ;;  %s3180_s24 = smov 0  }
   0x6   :  { %s3182_s25 = smov 0   ;;  %s3184_s26 = smov 0  }
   0x7 LB: > { %s2263_s27 = sadd.s32 4294967295, %s3126_s26   ;;  %s2264_s28 = sadd.s32 4294967294, %s3126_s26   ;;  %s3126_s26 = sphi %s3184_s26, %s23_s26   ;;  %s3122_s25 = sphi %s3182_s25, %s3720_s25   ;;  %s3118_s24 = sphi %s3180_s24, %s3719_s24   ;;  %s3114_s23 = sphi %s3178_s23, %s3718_s23   ;;  %s3110_s22 = sphi %s3176_s22, %s3717_s22   ;;  %s3106_s21 = sphi %s3174_s21, %s3716_s21  }
   0x8   : > { %p83_p0 = scmp.ne.s32.totalorder %s3110_s22, %s3106_s21  ;;  %p3208_p1 = scmp.eq.s32.totalorder %s2263_s27, 0 }
   0x9   : > { %p3212_p2 = scmp.eq.s32.totalorder %s2263_s27, 1  ;;  %p197_p3 = scmp.eq.s32.totalorder %s2264_s28, 1 }
   0xa   : > { %s3700_s29 = scalar_select %p3208_p1, 1, 0 }
   0xb   : > { %p3218_p4 = por %p3208_p1, %p83_p0  ;;  %p2265_p5 = scmp.ge.s32.totalorder %s3126_s26, 1 }
   0xc   : > { %p3223_p6 = por %p197_p3, %p83_p0  ;;  %p204_p7 = scmp.lt.s32.totalorder %s3126_s26, 3 }
   0xd   : > { %s3702_s7 = scalar_select %p3218_p4, 1, 0 }
   0xe   : > { %s3703_s8 = scalar_select %p3223_p6, 1, 0 }
   0xf   : > { %p3228_p8 = pnand %p2265_p5, %p204_p7  ;;  %s3128_s10 = smov [#allocation6]  }
  0x10   : > { %3704 = sst [smem:[#allocation13_spill]] %s3703_s8  ;;  %s216_s11 = sshll.u32 %s3128_s10, 4  ;;  %s3232_s11 = int_to_ptr.vmem [resolvable:$true] %s216_s11 }
  0x11   : > { %p2725_p9 = pneg %p3228_p8  ;;  %s3129_s13 = smov [#allocation8]  }
  0x12   : > { %s232_s14 = sshll.u32 %s3129_s13, 4  ;;  %s2954_s17 = scalar_lea.hbm %s3689_s2, 1024  ;;  %s3243_s14 = int_to_ptr.vmem [resolvable:$true] %s232_s14 }
  0x13   : > { %p3239_p11 = pnand %p2725_p9, %p3208_p1  ;;  %p2955_p12 = scmp.ne.s32.totalorder %s3689_s2, %s2954_s17 }
  0x14   : > { %p2961_p5 = scmp.lt.u32.totalorder %s2954_s17, %s3689_s2 }
  0x15   : > { %p2956_p13 = pneg %p3239_p11 }
  0x17   : > { %p2957_p0 = pnand %p2956_p13, %p2955_p12 }
  0x19   : > { %p2958_p3 = pneg %p2957_p0 }
  0x1b   : > { %p2963_p7 = pnand %p2961_p5, %p2958_p3 }
  0x1d   : > { %2966 = shalt.err (!%p2963_p7)
}
  0x1e   : > { %s2967_s28 = scalar_lea.vmem %s3232_s11, 1024  ;;  %p2975_p1 = scmp.lt.s32.totalorder %s3232_s11, %s3232_s11 }
  0x1f   : > { %p2968_p9 = scmp.ne.s32.totalorder %s3232_s11, %s2967_s28  ;;  %p2976_p12 = scmp.lt.s32.totalorder %s2967_s28, %s2967_s28 }
  0x21   : > { %p2970_p10 = pnand %p2968_p9, %p2956_p13  ;;  %p2977_p0 = por %p2976_p12, %p2975_p1 }
  0x23   : > { %p2971_p6 = pneg %p2970_p10 }
  0x25   : > { %p2978_p4 = pnand %p2977_p0, %p2971_p6 }
  0x27   : > { %2981 = shalt.err (!%p2978_p4)
}
  0x28   : > { %s3698_s10 = smov 64   ;;  %s3131_s13 = smov 4  }
  0x29   : > { %2728 = dma.hbm_to_vmem [thread:$0]  (!%p3239_p11), %s3689_s2, 1024, %s3232_s11, [#allocation7], %s3698_s10, %s3698_s10, %s3131_s13  }
  0x2a   : > { %s2982_s19 = scalar_lea.hbm %s3691_s4, 1024 }
  0x2b   : > { %p2983_p1 = scmp.ne.s32.totalorder %s3691_s4, %s2982_s19  ;;  %p2989_p10 = scmp.lt.u32.totalorder %s2982_s19, %s3691_s4 }
  0x2d   : > { %p2985_p4 = pnand %p2983_p1, %p2956_p13 }
  0x2f   : > { %p2986_p6 = pneg %p2985_p4 }
  0x31   : > { %p2991_p3 = pnand %p2989_p10, %p2986_p6 }
  0x33   : > { %2994 = shalt.err (!%p2991_p3)
}
  0x34   : > { %s2995_s11 = scalar_lea.vmem %s3243_s14, 1024  ;;  %p3003_p12 = scmp.lt.s32.totalorder %s3243_s14, %s3243_s14 }
  0x35   : > { %p2996_p5 = scmp.ne.s32.totalorder %s3243_s14, %s2995_s11  ;;  %p3004_p0 = scmp.lt.s32.totalorder %s2995_s11, %s2995_s11 }
  0x37   : > { %p2998_p7 = pnand %p2996_p5, %p2956_p13  ;;  %p3005_p1 = por %p3004_p0, %p3003_p12 }
  0x39   : > { %p2999_p9 = pneg %p2998_p7 }
  0x3b   : > { %p3006_p4 = pnand %p3005_p1, %p2999_p9 }
  0x3d   : > { %3009 = shalt.err (!%p3006_p4)
}
  0x3e   : > { %2731 = dma.hbm_to_vmem [thread:$0]  (!%p3239_p11), %s3691_s4, 1024, %s3243_s14, [#allocation7], %s3698_s10, %s3698_s10, %s3131_s13  }
  0x3f   : > { %s35_s12 = sadd.s32 1, %s3122_s25  ;;  %s70_s16 = sadd.s32 1, %s3114_s23 }
  0x40   : > { %p37_p13 = scmp.ge.s32.totalorder %s35_s12, 2  ;;  %p77_p6 = scmp.ne.s32.totalorder %s3114_s23, %s3110_s22 }
  0x41   : > { %p78_p10 = scmp.eq.s32.totalorder %s3126_s26, 0  ;;  %p2742_p3 = scmp.lt.s32.totalorder %s3126_s26, 2 }
  0x42   : > { %s3722_s12 = smov (%p37_p13, %s35_s12), 0  ;;  %p3313_p7 = por %p3212_p2, %p77_p6 }
  0x43   : > { %p79_p5 = por %p78_p10, %p77_p6  ;;  %s65_s18 = ssub.s32 %s3122_s25, %s3722_s12 }
  0x44   : > { %s3707_s17 = scalar_select %p3313_p7, 1, 0 }
  0x45   : > { %s256_s19 = sand.u32 1, %s3114_s23   ;;  %p68_p9 = scmp.eq.s32.totalorder %s65_s18, 0 }
  0x46   : > { %s2269_s14 = sshll.u32 %s256_s19, 10  ;;  %s2478_s20 = sshll.u32 %s3122_s25, 14 }
  0x47   : > { %s3322_s27 = scalar_select %p68_p9, %s3114_s23, %s70_s16  }
  0x48   : > { %s3327_s8 = scalar_lea.hbm %s3688_s1, %s2478_s20  ;;  %s260_s30 = scalar_lea.vmem [#allocation3], %s2269_s14 }
  0x49   : > { %s270_s15 = sshll.u32 %s260_s30, 4  ;;  %p3331_p2 = pnand %p2742_p3, %p79_p5  ;;  %s3335_s15 = int_to_ptr.vmem [resolvable:$true] %s270_s15 }
  0x4a   : > { %s3337_s16 = scalar_lea.sflag [#allocation4], %s256_s19  ;;  %s3010_s18 = scalar_lea.hbm %s3327_s8, 16384 }
  0x4b   : > { %p3011_p11 = scmp.ne.s32.totalorder %s3327_s8, %s3010_s18  ;;  %p3012_p12 = pneg %p3331_p2 }
  0x4c   : > { %s3015_s28 = scalar_lea.hbm %s3688_s1, 32768  ;;  %p3016_p4 = scmp.lt.u32.totalorder %s3327_s8, %s3688_s1 }
  0x4d   : > { %p3013_p0 = pnand %p3012_p12, %p3011_p11  ;;  %p3017_p13 = scmp.lt.u32.totalorder %s3015_s28, %s3010_s18 }
  0x4e   : > { %p3019_p10 = scmp.lt.u32.totalorder %s3010_s18, %s3327_s8 }
  0x4f   : > { %p3014_p1 = pneg %p3013_p0  ;;  %p3018_p6 = por %p3017_p13, %p3016_p4 }
  0x51   : > { %p3020_p3 = por %p3019_p10, %p3018_p6 }
  0x53   : > { %p3021_p5 = pnand %p3020_p3, %p3014_p1 }
  0x55   : > { %3024 = shalt.err (!%p3021_p5)
}
  0x56   : > { %s3025_s19 = scalar_lea.vmem %s3335_s15, 16384  ;;  %s3132_s14 = smov [#allocation3]  }
  0x57   : > { %p3026_p9 = scmp.ne.s32.totalorder %s3335_s15, %s3025_s19  ;;  %s3030_s20 = sshll.u32 %s3132_s14, 4  ;;  %s3031_s20 = int_to_ptr.vmem [resolvable:$false] %s3030_s20 }
  0x58   : > { %s3032_s11 = scalar_lea.vmem %s3031_s20, 32768  ;;  %p3033_p7 = scmp.lt.s32.totalorder %s3335_s15, %s3031_s20 }
  0x59   : > { %p3028_p11 = pnand %p3026_p9, %p3012_p12  ;;  %p3034_p4 = scmp.lt.s32.totalorder %s3032_s11, %s3025_s19 }
  0x5b   : > { %p3029_p0 = pneg %p3028_p11  ;;  %p3035_p13 = por %p3034_p4, %p3033_p7 }
  0x5d   : > { %p3036_p6 = pnand %p3035_p13, %p3029_p0 }
  0x5f   : > { %3039 = shalt.err (!%p3036_p6)
}
  0x60   : > { %s3709_s18 = smov 64   ;;  %282 = sbr.rel (%p3228_p8) target bundleno = 1029 (0x405), region = 44 }
  0x61   : > { %2735 = dma.hbm_to_vmem [thread:$0]  (!%p3331_p2), %s3327_s8, 16384, %s3335_s15, %s3337_s16, %s3709_s18, %s3709_s18, %s3131_s13  }
  0x62   : > { %s3371_s28 = sand.u32 (!%p3228_p8), 1, %s3110_s22   ;;  %p3710_p7 = scmp.ne.s32.totalorder (!%p3228_p8), %s3702_s7, 0 }
  0x63   : > { %s2274_s30 = sshll.u32 (!%p3228_p8), %s3371_s28, 10  ;;  %s285_s19 = scalar_lea.sflag (!%p3228_p8), [#allocation4], %s3371_s28 }
  0x64   : > { %s3375_s14 = scalar_lea.vmem (!%p3228_p8), [#allocation3], %s2274_s30 }
  0x67   : > { %3093 = dma.done.wait (%p3710_p7), %s285_s19, 16384  }
  0x68   : > { %3095 = vsyncadd (%p3710_p7), %s285_s19, 4294950912  ;;  %p3711_p2 = scmp.ne.s32.totalorder %s3700_s29, 0 }
  0x6a   : > { %3097 = dma.done.wait (%p3711_p2), [#allocation7], 2048  }
  0x6b   : > { %3099 = vsyncadd (%p3711_p2), [#allocation7], 4294965248  ;;  %p329_p8 = scmp.lt.s32.totalorder %s3118_s24, 1  ;;  %v342_v0 = vlaneseq  ;;  %v3133_v1 = vmov 0   ;;  %v3134_v2 = vmov 1966171168  }
  0x6c   : > { %2803 = vset.pattern.permute.xlu0 %v3133_v1  ;;  %v351_v3 = vunpack.c.l.s4 %v3134_v2  ;;  %2804 = vset.pattern.permute.xlu1 %v3133_v1  ;;  %v2806_v10 = vld [vmem:[%s3375_s14 + $0x40] sm:$0xff]   ;;  %v2808_v15 = vld [vmem:[%s3375_s14 + $0x48] sm:$0xff]   ;;  %v2812_v26 = vld [vmem:[%s3375_s14 + $0x50] sm:$0xff]   ;;  %s2277_s16 = sshll.u32 %s3371_s28, 3  ;;  %s2474_s18 = sshll.u32 %s3118_s24, 7 }
  0x6d   : > { %s330_s9 = scalar_select %p329_p8, %s3118_s24, 1  ;;  %v3388_v4 = vshrl.u32 %v342_v0, 7  ;;  %v2807_v12 = vld [vmem:[%s3375_s14] sm:$0xff]   ;;  %2479 = vmatprep.subr.bf16.mxu0 %v2806_v10  ;;  %v2810_v22 = vld [vmem:[%s3375_s14 + $0x8] sm:$0xff]   ;;  %v2814_v29 = vld [vmem:[%s3375_s14 + $0x10] sm:$0xff]   ;;  %v3429_v59 = vand.u32 127, %v342_v0 }
  0x6e   : > { %v352_v5 = vunpack.c.0.s8 %v351_v3  ;;  %2480 = vmatpush3.bf16.msra.mxu0 %v2807_v12  ;;  %v2809_v17 = vld [vmem:[%s3375_s14 + $0xc0] sm:$0xff]   ;;  %v2813_v27 = vld [vmem:[%s3375_s14 + $0xc8] sm:$0xff]   ;;  %v2816_v32 = vld [vmem:[%s3375_s14 + $0x58] sm:$0xff]   ;;  %s328_s30 = scalar_lea.vmem [#allocation9], %s2277_s16  ;;  %s2138_s29 = scalar_lea.sflag [#allocation5], %s3371_s28 }
  0x6f   : > { %s2278_s7 = sshll.u32 %s330_s9, 3  ;;  %2481 = vmatprep.subr.bf16.mxu0 %v2808_v15  ;;  %2501 = vmatprep.subr.bf16.mxu1 %v2809_v17  ;;  %v2811_v23 = vld [vmem:[%s3375_s14 + $0x80] sm:$0xff]   ;;  %v2815_v30 = vld [vmem:[%s3375_s14 + $0x88] sm:$0xff]   ;;  %v2817_v33 = vld [vmem:[%s3375_s14 + $0xd0] sm:$0xff]   ;;  %v3432_v60 = vsub.s32 0, %v3388_v4  ;;  %v3435_v61 = vadd.s32 128, %v3429_v59 }
  0x70   : > { %s332_s13 = scalar_lea.vmem %s3687_s0, %s2278_s7  ;;  %v355_v6 = vsub.s32 %v352_v5, %v3388_v4  ;;  %2502 = vmatpush3.bf16.msra.mxu1 %v2811_v23  ;;  %v2818_v35 = vld [vmem:[%s3375_s14 + $0x18] sm:$0xff]   ;;  %v2819_v36 = vld [vmem:[%s3375_s14 + $0x90] sm:$0xff]   ;;  %v2820_v38 = vld [vmem:[%s3375_s14 + $0x60] sm:$0xff]   ;;  %s2151_s19 = sshll.u32 %s328_s30, 4  ;;  %s3640_s19 = int_to_ptr.vmem [resolvable:$true] %s2151_s19 }
  0x71   : > { %v348_v7 = vld [vmem:[%s332_s13] sm:$0xff]  ;;  %2503 = vmatprep.subr.bf16.mxu1 %v2813_v27  ;;  %v2821_v39 = vld [vmem:[%s3375_s14 + $0xd8] sm:$0xff]   ;;  %v2824_v43 = vld [vmem:[%s3375_s14 + $0x68] sm:$0xff]   ;;  %s3638_s7 = scalar_lea.hbm %s3693_s6, %s2474_s18  ;;  %s3040_s24 = scalar_lea.vmem %s3640_s19, 128 }
  0x72   : > { %v356_v8 = vrot.slane %v348_v7, %v355_v6  ;;  %vm1898_vm0 = vcmp.gt.s32.totalorder %v348_v7, 1  ;;  %v349_v9 = vcombine.high %v348_v7, %v348_v7  ;;  %2482 = vmatpush3.bf16.msra.mxu0 %v2810_v22  ;;  %v2822_v40 = vld [vmem:[%s3375_s14 + $0x20] sm:$0xff]   ;;  %v2823_v42 = vld [vmem:[%s3375_s14 + $0x98] sm:$0xff]   ;;  %v2826_v45 = vld [vmem:[%s3375_s14 + $0x28] sm:$0xff]   ;;  %p3041_p12 = scmp.ne.s32.totalorder %s3640_s19, %s3040_s24  ;;  %p3712_p1 = scmp.ne.s32.totalorder %s3707_s17, 0 }
  0x73   : > { %v1899_v11 = vsel %vm1898_vm0, %v348_v7, 1  ;;  %2483 = vmatprep.subr.bf16.mxu0 %v2812_v26  ;;  %v2825_v44 = vld [vmem:[%s3375_s14 + $0xe0] sm:$0xff]   ;;  %v2828_v47 = vld [vmem:[%s3375_s14 + $0x70] sm:$0xff]   ;;  %v2829_v48 = vld [vmem:[%s3375_s14 + $0xe8] sm:$0xff]   ;;  %s3138_s10 = smov [#allocation9]  }
  0x74   : > { %v372_v13 = vrot.slane %v356_v8, %v355_v6  ;;  %vm1900_vm1 = vcmp.lt.s32.totalorder %v1899_v11, 256  ;;  %v364_v14 = vcombine.high %v356_v8, %v356_v8  ;;  %v363_v20 = vrot.slane %v349_v9, %v355_v6  ;;  %2504 = vmatpush3.bf16.msra.mxu1 %v2815_v30  ;;  %v2827_v46 = vld [vmem:[%s3375_s14 + $0xa0] sm:$0xff]   ;;  %v2830_v49 = vld [vmem:[%s3375_s14 + $0x30] sm:$0xff]   ;;  %v2831_v50 = vld [vmem:[%s3375_s14 + $0xa8] sm:$0xff]   ;;  %p3042_p10 = pnand %p3041_p12, %p3712_p1  ;;  %s3044_s13 = sshll.u32 %s3138_s10, 4  ;;  %s3045_s13 = int_to_ptr.vmem [resolvable:$false] %s3044_s13 }
  0x75   : > { %v1901_v16 = vsel %vm1900_vm1, %v1899_v11, 256  ;;  %2505 = vmatprep.subr.bf16.mxu1 %v2817_v33  ;;  %v2832_v51 = vld [vmem:[%s3375_s14 + $0x78] sm:$0xff]   ;;  %v2833_v52 = vld [vmem:[%s3375_s14 + $0xf0] sm:$0xff]   ;;  %v2837_v56 = vld [vmem:[%s3375_s14 + $0x140] sm:$0xff]   ;;  %s3046_s8 = scalar_lea.vmem %s3045_s13, 256  ;;  %p3047_p5 = scmp.lt.s32.totalorder %s3640_s19, %s3045_s13 }
  0x76   : > { %v1902_v18 = vcvt.s32.f32 %v1901_v16  ;;  %399 = vperm.xlu0 %2803, %v372_v13   ;;  %v386_v19 = vrot.slane %v364_v14, %v355_v6  ;;  %v394_v21 = vcombine.high %v372_v13, %v372_v13  ;;  %v365_v25 = vcombine.high %v363_v20, %v363_v20  ;;  %2484 = vmatpush3.bf16.msra.mxu0 %v2814_v29  ;;  %v2834_v53 = vld [vmem:[%s3375_s14 + $0x38] sm:$0xff]   ;;  %v2835_v54 = vld [vmem:[%s3375_s14 + $0xb0] sm:$0xff]   ;;  %v2841_v58 = vld [vmem:[%s3375_s14 + $0x1c0] sm:$0xff]   ;;  %p3043_p3 = pneg %p3042_p10  ;;  %p3048_p9 = scmp.lt.s32.totalorder %s3046_s8, %s3040_s24 }
  0x77   : > { %v379_v28 = vrot.slane %v363_v20, %v355_v6  ;;  %2485 = vmatprep.subr.bf16.mxu0 %v2816_v32  ;;  %v2836_v55 = vld [vmem:[%s3375_s14 + $0xf8] sm:$0xff]   ;;  %v2839_v1 = vld [vmem:[%s3375_s14 + $0x100] sm:$0xff]   ;;  %v2840_v3 = vld [vmem:[%s3375_s14 + $0x148] sm:$0xff]  }
  0x78   : > { %413 = vperm.xlu1 %2804, %v394_v21   ;;  %v396_v24 = vcombine.high %v386_v19, %v386_v19  ;;  %2950 = vrcp.f32 %v1902_v18  ;;  %v393_v31 = vrot.slane %v365_v25, %v355_v6  ;;  %2506 = vmatpush3.bf16.msra.mxu1 %v2819_v36  ;;  %v2838_v57 = vld [vmem:[%s3375_s14 + $0xb8] sm:$0xff]   ;;  %v3135_v6 = vmov 1.0|1.0   ;;  %v2842_v8 = vld [vmem:[%s3375_s14 + $0x108] sm:$0xff]   ;;  %v2843_v11 = vld [vmem:[%s3375_s14 + $0x180] sm:$0xff]   ;;  %p3049_p11 = por %p3048_p9, %p3047_p5 }
  0x79   : > { %v395_v34 = vcombine.high %v379_v28, %v379_v28  ;;  %2507 = vmatprep.subr.bf16.mxu1 %v2821_v39  ;;  %v2844_v12 = vld [vmem:[%s3375_s14 + $0x150] sm:$0xff]   ;;  %v2845_v13 = vld [vmem:[%s3375_s14 + $0x1c8] sm:$0xff]   ;;  %v2850_v23 = vld [vmem:[%s3375_s14 + $0x118] sm:$0xff]  }
  0x7a   : > { %406 = vperm.xlu0 %2803, %v386_v19   ;;  %v397_v37 = vcombine.high %v393_v31, %v393_v31  ;;  %2486 = vmatpush3.bf16.msra.mxu0 %v2818_v35  ;;  %v2846_v16 = vld [vmem:[%s3375_s14 + $0x110] sm:$0xff]   ;;  %v2847_v17 = vld [vmem:[%s3375_s14 + $0x188] sm:$0xff]   ;;  %v2848_v19 = vld [vmem:[%s3375_s14 + $0x158] sm:$0xff]   ;;  %p3050_p0 = pnand %p3049_p11, %p3043_p3 }
  0x7b   : > { %2487 = vmatprep.subr.bf16.mxu0 %v2820_v38  ;;  %v2849_v20 = vld [vmem:[%s3375_s14 + $0x1d0] sm:$0xff]   ;;  %v2852_v25 = vld [vmem:[%s3375_s14 + $0x160] sm:$0xff]   ;;  %v2853_v26 = vld [vmem:[%s3375_s14 + $0x1d8] sm:$0xff]  }
  0x7c   : > { %420 = vperm.xlu1 %2804, %v396_v24   ;;  %2508 = vmatpush3.bf16.msra.mxu1 %v2823_v42  ;;  %v2851_v24 = vld [vmem:[%s3375_s14 + $0x190] sm:$0xff]   ;;  %v2854_v27 = vld [vmem:[%s3375_s14 + $0x120] sm:$0xff]   ;;  %v2856_v29 = vld [vmem:[%s3375_s14 + $0x168] sm:$0xff]  }
  0x7d   : > { %2509 = vmatprep.subr.bf16.mxu1 %v2825_v44  ;;  %v2857_v30 = vld [vmem:[%s3375_s14 + $0x1e0] sm:$0xff]   ;;  %v2860_v33 = vld [vmem:[%s3375_s14 + $0x170] sm:$0xff]   ;;  %v2863_v36 = vld [vmem:[%s3375_s14 + $0x1a8] sm:$0xff]  }
  0x7e   : > { %427 = vperm.xlu0 %2803, %v379_v28   ;;  %2488 = vmatpush3.bf16.msra.mxu0 %v2822_v40  ;;  %v2855_v28 = vld [vmem:[%s3375_s14 + $0x198] sm:$0xff]   ;;  %v2859_v32 = vld [vmem:[%s3375_s14 + $0x1a0] sm:$0xff]   ;;  %v2862_v35 = vld [vmem:[%s3375_s14 + $0x130] sm:$0xff]  }
  0x7f   : > { %2489 = vmatprep.subr.bf16.mxu0 %v2824_v43  ;;  %v2865_v38 = vld [vmem:[%s3375_s14 + $0x1f0] sm:$0xff]   ;;  %v2866_v39 = vld [vmem:[%s3375_s14 + $0x138] sm:$0xff]   ;;  %v2869_v43 = vld [vmem:[%s3375_s14 + $0x240] sm:$0xff]  }
  0x80   : > { %434 = vperm.xlu1 %2804, %v393_v31   ;;  %2510 = vmatpush3.bf16.msra.mxu1 %v2827_v46  ;;  %v2858_v31 = vld [vmem:[%s3375_s14 + $0x128] sm:$0xff]   ;;  %v2867_v40 = vld [vmem:[%s3375_s14 + $0x1b0] sm:$0xff]   ;;  %v2868_v42 = vld [vmem:[%s3375_s14 + $0x1f8] sm:$0xff]  }
  0x81   : > { %2511 = vmatprep.subr.bf16.mxu1 %v2829_v48  ;;  %v2870_v44 = vld [vmem:[%s3375_s14 + $0x1b8] sm:$0xff]   ;;  %v2873_v48 = vld [vmem:[%s3375_s14 + $0x2c0] sm:$0xff]  }
  0x82   : > { %441 = vperm.xlu0 %2803, %v395_v34   ;;  %v2951_v41 = vpop.eup %2950  ;;  %2490 = vmatpush3.bf16.msra.mxu0 %v2826_v45  ;;  %v2861_v34 = vld [vmem:[%s3375_s14 + $0x1e8] sm:$0xff]   ;;  %v2871_v45 = vld [vmem:[%s3375_s14 + $0x200] sm:$0xff]  }
  0x83   : > { %2491 = vmatprep.subr.bf16.mxu0 %v2828_v47  ;;  %v2872_v47 = vld [vmem:[%s3375_s14 + $0x248] sm:$0xff]  }
  0x84   : > { %448 = vperm.xlu1 %2804, %v397_v37   ;;  %2512 = vmatpush3.bf16.msra.mxu1 %v2831_v50  ;;  %v2864_v37 = vld [vmem:[%s3375_s14 + $0x178] sm:$0xff]   ;;  %v2875_v50 = vld [vmem:[%s3375_s14 + $0x280] sm:$0xff]  }
  0x85   : > { %2513 = vmatprep.subr.bf16.mxu1 %v2833_v52  ;;  %v2877_v52 = vld [vmem:[%s3375_s14 + $0x2c8] sm:$0xff]  }
  0x86   : > { %1907 = vperm.xlu0 %2803, %v2951_v41   ;;  %2492 = vmatpush3.bf16.msra.mxu0 %v2830_v49  ;;  %v2874_v49 = vld [vmem:[%s3375_s14 + $0x208] sm:$0xff]  }
  0x87   : > { %2493 = vmatprep.subr.bf16.mxu0 %v2832_v51  ;;  %v2876_v51 = vld [vmem:[%s3375_s14 + $0x250] sm:$0xff]  }
  0x88   : > { %2514 = vmatpush3.bf16.msra.mxu1 %v2835_v54  ;;  %v2879_v54 = vld [vmem:[%s3375_s14 + $0x288] sm:$0xff]  }
  0x89   : > { %2515 = vmatprep.subr.bf16.mxu1 %v2836_v55  ;;  %v2880_v55 = vld [vmem:[%s3375_s14 + $0x258] sm:$0xff]  }
  0x8a   : > { %2494 = vmatpush3.bf16.msra.mxu0 %v2834_v53  ;;  %v2878_v53 = vld [vmem:[%s3375_s14 + $0x210] sm:$0xff]  }
  0x8b   : > { %2523 = vmatprep.subr.bf16.mxu0 %v2837_v56  ;;  %v2881_v56 = vld [vmem:[%s3375_s14 + $0x2d0] sm:$0xff]  }
  0x8c   : > { %2516 = vmatpush3.bf16.msra.mxu1 %v2838_v57  ;;  %v2882_v57 = vld [vmem:[%s3375_s14 + $0x218] sm:$0xff]  }
  0x8d   : > { %2545 = vmatprep.subr.bf16.mxu1 %v2841_v58  ;;  %v2883_v58 = vld [vmem:[%s3375_s14 + $0x290] sm:$0xff]  }
  0xf5   : > { %v400_v62 = vpop.permute.xlu0 %399 }
  0xf6   : > { %v404_v63 = vrot.slane %v400_v62, %v3432_v60  ;;  %v2885_v62 = vld [vmem:[%s3375_s14 + $0x2d8] sm:$0xff]  }
  0xf7   : > { %v414_v2 = vpop.permute.xlu1 %413 }
  0xf8   : > { %vm454_vm2 = vcmp.lt.s32.totalorder %v3429_v59, %v404_v63  ;;  %vm455_vm3 = vcmp.lt.s32.totalorder %v3435_v61, %v404_v63  ;;  %v3443_v0 = vrot.slane %v414_v2, %v3432_v60  ;;  %v2886_v63 = vld [vmem:[%s3375_s14 + $0x220] sm:$0xff]   ;;  %v2888_v2 = vld [vmem:[%s3375_s14 + $0x268] sm:$0xff]  }
  0xf9   : > { %vm2313_vm4 = vmpackc.low %vm454_vm2, %vm454_vm2  ;;  %v407_v4 = vpop.permute.xlu0 %406 }
  0xfa   : > { %v411_v5 = vrot.slane %v407_v4, %v3432_v60  ;;  %vm2311_vm5 = vmpackc.low %vm455_vm3, %vm455_vm3  ;;  %vm459_vm6 = vcmp.lt.s32.totalorder %v3435_v61, %v3443_v0  ;;  %vm458_vm0 = vcmp.lt.s32.totalorder %v3429_v59, %v3443_v0  ;;  %v2890_v0 = vld [vmem:[%s3375_s14 + $0x228] sm:$0xff]   ;;  %v2891_v4 = vld [vmem:[%s3375_s14 + $0x2a0] sm:$0xff]  }
  0xfb   : > { %2312 = vmatprep.mubr.msk.bf16.mxu0 %vm2311_vm5, %v3135_v6  ;;  %vm2351_vm7 = vmpackc.low %vm459_vm6, %vm459_vm6  ;;  %v421_v7 = vpop.permute.xlu1 %420 }
  0xfc   : > { %vm456_vm8 = vcmp.lt.s32.totalorder %v3429_v59, %v411_v5  ;;  %2314 = vmatmul.mubr.msk.bf16.vlgmr.msra.gmra.mrb[0].mxu0 %vm2313_vm4, %v3135_v6  ;;  %vm457_vm9 = vcmp.lt.s32.totalorder %v3435_v61, %v411_v5  ;;  %v3454_v9 = vrot.slane %v421_v7, %v3432_v60  ;;  %vm2353_vm1 = vmpackc.low %vm458_vm0, %vm458_vm0  ;;  %v2892_v5 = vld [vmem:[%s3375_s14 + $0x270] sm:$0xff]   ;;  %v2893_v7 = vld [vmem:[%s3375_s14 + $0x2e8] sm:$0xff]  }
  0xfd   : > { %vm2333_vm10 = vmpackc.low %vm456_vm8, %vm456_vm8  ;;  %2524 = vmatpush3.bf16.msra.mxu0 %v2839_v1  ;;  %v3456_v10 = vpop.permute.xlu0 %427  ;;  %2352 = vmatprep.mubr.msk.bf16.mxu0 %vm2351_vm7, %v3135_v6  ;;  %v2887_v1 = vld [vmem:[%s3375_s14 + $0x298] sm:$0xff]  }
  0xfe   : > { %vm2331_vm11 = vmpackc.low %vm457_vm9, %vm457_vm9  ;;  %2525 = vmatprep.subr.bf16.mxu0 %v2840_v3  ;;  %vm461_vm12 = vcmp.lt.s32.totalorder %v3435_v61, %v3454_v9  ;;  %v3503_v41 = vrot.slane %v3456_v10, %v3432_v60  ;;  %vm460_vm3 = vcmp.lt.s32.totalorder %v3429_v59, %v3454_v9  ;;  %v2889_v3 = vld [vmem:[%s3375_s14 + $0x2e0] sm:$0xff]   ;;  %v2895_v9 = vld [vmem:[%s3375_s14 + $0x2a8] sm:$0xff]  }
  0xff   : > { %2332 = vmatprep.mubr.msk.bf16.mxu1 %vm2331_vm11, %v3135_v6  ;;  %v3465_v14 = vpop.permute.xlu1 %434  ;;  %vm2371_vm13 = vmpackc.low %vm461_vm12, %vm461_vm12  ;;  %v2896_v10 = vld [vmem:[%s3375_s14 + $0x278] sm:$0xff]  }
 0x100   : > { %2334 = vmatmul.mubr.msk.bf16.vlgmr.msra.gmra.mrb[0].mxu1 %vm2333_vm10, %v3135_v6  ;;  %vm463_vm2 = vcmp.lt.s32.totalorder %v3435_v61, %v3503_v41  ;;  %v3515_v46 = vrot.slane %v3465_v14, %v3432_v60  ;;  %vm2373_vm6 = vmpackc.low %vm460_vm3, %vm460_vm3  ;;  %v2900_v14 = vld [vmem:[%s3375_s14 + $0x2f8] sm:$0xff]   ;;  %vm462_vm8 = vcmp.lt.s32.totalorder %v3429_v59, %v3503_v41  ;;  %v2926_v41 = vld [vmem:[%s3375_s14 + $0x330] sm:$0xff]   ;;  %vm1872_vm3 = vcmask 1041409  }
 0x101   : > { %2526 = vmatpush3.bf16.msra.mxu0 %v2842_v8  ;;  %2546 = vmatpush3.bf16.msra.mxu1 %v2843_v11  ;;  %v442_v15 = vpop.permute.xlu0 %441  ;;  %vm2391_vm4 = vmpackc.low %vm463_vm2, %vm463_vm2  ;;  %v2894_v8 = vld [vmem:[%s3375_s14 + $0x230] sm:$0xff]   ;;  %vm3137_vm2 = vmmov 0  }
 0x102   : > { %v3471_v18 = vrot.slane %v442_v15, %v3432_v60  ;;  %2527 = vmatprep.subr.bf16.mxu0 %v2844_v12  ;;  %2547 = vmatprep.subr.bf16.mxu1 %v2845_v13  ;;  %vm465_vm5 = vcmp.lt.s32.totalorder %v3435_v61, %v3515_v46  ;;  %v2897_v11 = vld [vmem:[%s3375_s14 + $0x2f0] sm:$0xff]   ;;  %v2898_v12 = vld [vmem:[%s3375_s14 + $0x238] sm:$0xff]   ;;  %v2901_v15 = vld [vmem:[%s3375_s14 + $0x340] sm:$0xff]   ;;  %vm464_vm10 = vcmp.lt.s32.totalorder %v3429_v59, %v3515_v46 }
 0x103   : > { %v449_v21 = vpop.permute.xlu1 %448  ;;  %2372 = vmatprep.mubr.msk.bf16.mxu1 %vm2371_vm13, %v3135_v6  ;;  %vm2411_vm7 = vmpackc.low %vm465_vm5, %vm465_vm5  ;;  %v2899_v13 = vld [vmem:[%s3375_s14 + $0x2b0] sm:$0xff]   ;;  %vm1878_vm5 = vcmask 1043459  }
 0x104   : > { %vm467_vm14 = vcmp.lt.s32.totalorder %v3435_v61, %v3471_v18  ;;  %v3479_v22 = vrot.slane %v449_v21, %v3432_v60  ;;  %v2884_v60 = vld [vmem:[%s3375_s14 + $0x260] sm:$0xff]   ;;  %vm2393_vm9 = vmpackc.low %vm462_vm8, %vm462_vm8  ;;  %v2906_v21 = vld [vmem:[%s3375_s14 + $0x308] sm:$0xff]   ;;  %vm1887_vm8 = vcmask 1046534  }
 0x105   : > { %2528 = vmatpush3.bf16.msra.mxu0 %v2846_v16  ;;  %2548 = vmatpush3.bf16.msra.mxu1 %v2847_v17  ;;  %v2902_v16 = vld [vmem:[%s3375_s14 + $0x2b8] sm:$0xff]   ;;  %v2903_v17 = vld [vmem:[%s3375_s14 + $0x300] sm:$0xff]   ;;  %vm2431_vm11 = vmpackc.low %vm467_vm14, %vm467_vm14  ;;  %vm466_vm14 = vcmp.lt.s32.totalorder %v3429_v59, %v3471_v18 }
 0x106   : > { %2529 = vmatprep.subr.bf16.mxu0 %v2848_v19  ;;  %2549 = vmatprep.subr.bf16.mxu1 %v2849_v20  ;;  %vm469_vm15 = vcmp.lt.s32.totalorder %v3435_v61, %v3479_v22  ;;  %v2904_v19 = vld [vmem:[%s3375_s14 + $0x348] sm:$0xff]   ;;  %v2905_v20 = vld [vmem:[%s3375_s14 + $0x3c0] sm:$0xff]   ;;  %vm2413_vm12 = vmpackc.low %vm464_vm10, %vm464_vm10  ;;  %vm468_vm0 = vcmp.lt.s32.totalorder %v3429_v59, %v3479_v22 }
 0x107   : > { %vm2451_vm13 = vmpackc.low %vm469_vm15, %vm469_vm15  ;;  %v2914_v61 = vld [vmem:[%s3375_s14 + $0x318] sm:$0xff]   ;;  %v2931_v46 = vld [vmem:[%s3375_s14 + $0x3b0] sm:$0xff]  }
 0x108   : > { %vm2433_vm15 = vmpackc.low %vm466_vm14, %vm466_vm14  ;;  %v2935_v18 = vld [vmem:[#allocation6 + $0x8] sm:$0xff]   ;;  %v2937_v59 = vld [vmem:[#allocation6 + $0x18] sm:$0xff]  }
 0x109   : > { %2530 = vmatpush3.bf16.msra.mxu0 %v2850_v23  ;;  %2550 = vmatpush3.bf16.msra.mxu1 %v2851_v24  ;;  %v2907_v23 = vld [vmem:[%s3375_s14 + $0x380] sm:$0xff]   ;;  %v2908_v24 = vld [vmem:[%s3375_s14 + $0x350] sm:$0xff]   ;;  %v2939_v22 = vld [vmem:[#allocation6 + $0x28] sm:$0xff]  }
 0x10a   : > { %2531 = vmatprep.subr.bf16.mxu0 %v2852_v25  ;;  %2551 = vmatprep.subr.bf16.mxu1 %v2853_v26  ;;  %v2909_v25 = vld [vmem:[%s3375_s14 + $0x3c8] sm:$0xff]   ;;  %v2910_v26 = vld [vmem:[%s3375_s14 + $0x310] sm:$0xff]  }
 0x10d   : > { %2532 = vmatpush3.bf16.msra.mxu0 %v2854_v27  ;;  %2552 = vmatpush3.bf16.msra.mxu1 %v2855_v28  ;;  %v2911_v27 = vld [vmem:[%s3375_s14 + $0x388] sm:$0xff]   ;;  %v2912_v28 = vld [vmem:[%s3375_s14 + $0x358] sm:$0xff]  }
 0x10e   : > { %2533 = vmatprep.subr.bf16.mxu0 %v2856_v29  ;;  %2553 = vmatprep.subr.bf16.mxu1 %v2857_v30  ;;  %v2913_v29 = vld [vmem:[%s3375_s14 + $0x3d0] sm:$0xff]  }
 0x10f   : > { %v2915_v30 = vld [vmem:[%s3375_s14 + $0x390] sm:$0xff]  }
 0x111   : > { %2534 = vmatpush3.bf16.msra.mxu0 %v2858_v31  ;;  %2554 = vmatpush3.bf16.msra.mxu1 %v2859_v32  ;;  %v2916_v31 = vld [vmem:[%s3375_s14 + $0x360] sm:$0xff]   ;;  %v2917_v32 = vld [vmem:[%s3375_s14 + $0x3d8] sm:$0xff]  }
 0x112   : > { %2535 = vmatprep.subr.bf16.mxu0 %v2860_v33  ;;  %2555 = vmatprep.subr.bf16.mxu1 %v2861_v34  ;;  %v2918_v33 = vld [vmem:[%s3375_s14 + $0x320] sm:$0xff]   ;;  %v2919_v34 = vld [vmem:[%s3375_s14 + $0x398] sm:$0xff]  }
 0x115   : > { %2536 = vmatpush3.bf16.msra.mxu0 %v2862_v35  ;;  %2556 = vmatpush3.bf16.msra.mxu1 %v2863_v36  ;;  %v2920_v35 = vld [vmem:[%s3375_s14 + $0x368] sm:$0xff]   ;;  %v2921_v36 = vld [vmem:[%s3375_s14 + $0x3e0] sm:$0xff]  }
 0x116   : > { %2537 = vmatprep.subr.bf16.mxu0 %v2864_v37  ;;  %2557 = vmatprep.subr.bf16.mxu1 %v2865_v38  ;;  %v2922_v37 = vld [vmem:[%s3375_s14 + $0x328] sm:$0xff]   ;;  %v2923_v38 = vld [vmem:[%s3375_s14 + $0x3a0] sm:$0xff]  }
 0x119   : > { %2538 = vmatpush3.bf16.msra.mxu0 %v2866_v39  ;;  %2558 = vmatpush3.bf16.msra.mxu1 %v2867_v40  ;;  %v2924_v39 = vld [vmem:[%s3375_s14 + $0x370] sm:$0xff]   ;;  %v2925_v40 = vld [vmem:[%s3375_s14 + $0x3e8] sm:$0xff]  }
 0x11a   : > { %2559 = vmatprep.subr.bf16.mxu1 %v2868_v42  ;;  %2567 = vmatprep.subr.bf16.mxu0 %v2869_v43  ;;  %v2927_v42 = vld [vmem:[%s3375_s14 + $0x3a8] sm:$0xff]   ;;  %v2928_v43 = vld [vmem:[%s3375_s14 + $0x378] sm:$0xff]  }
 0x11c   : > { %2354 = vmatmul.mubr.msk.bf16.vlgmr.msra.gmra.mrb[4].mxu0 %vm2353_vm1, %v3135_v6  ;;  %vm2453_vm1 = vmpackc.low %vm468_vm0, %vm468_vm0 }
 0x11d   : > { %2560 = vmatpush3.bf16.msra.mxu1 %v2870_v44  ;;  %2568 = vmatpush3.bf16.msra.mxu0 %v2871_v45  ;;  %v2929_v44 = vld [vmem:[%s3375_s14 + $0x3f0] sm:$0xff]   ;;  %v2930_v45 = vld [vmem:[%s3375_s14 + $0x338] sm:$0xff]  }
 0x11e   : > { %2392 = vmatprep.mubr.msk.bf16.mxu0 %vm2391_vm4, %v3135_v6  ;;  %2569 = vmatprep.subr.bf16.mxu0 %v2872_v47  ;;  %v2932_v47 = vld [vmem:[%s3375_s14 + $0x3f8] sm:$0xff]   ;;  %vm1875_vm4 = vcmask 1042434  }
 0x11f   : > { %2589 = vmatprep.subr.bf16.mxu1 %v2873_v48  ;;  %v2933_v48 = vld [vmem:[%s3375_s14 + $0x3b8] sm:$0xff]  }
 0x120   : > { %2374 = vmatmul.mubr.msk.bf16.vlgmr.msra.gmra.mrb[4].mxu1 %vm2373_vm6, %v3135_v6  ;;  %vm1881_vm6 = vcmask 1044484  }
 0x121   : > { %2570 = vmatpush3.bf16.msra.mxu0 %v2874_v49  ;;  %2590 = vmatpush3.bf16.msra.mxu1 %v2875_v50  ;;  %v2934_v49 = vld [vmem:[#allocation6] sm:$0xff]   ;;  %v3136_v50 = vmov 0.0  }
 0x122   : > { %2412 = vmatprep.mubr.msk.bf16.mxu1 %vm2411_vm7, %v3135_v6  ;;  %2571 = vmatprep.subr.bf16.mxu0 %v2876_v51  ;;  %v2936_v51 = vld [vmem:[#allocation6 + $0x10] sm:$0xff]   ;;  %vm1884_vm7 = vcmask 1045509  }
 0x123   : > { %2591 = vmatprep.subr.bf16.mxu1 %v2877_v52  ;;  %v2940_v52 = vld [vmem:[#allocation6 + $0x30] sm:$0xff]  }
 0x125   : > { %2572 = vmatpush3.bf16.msra.mxu0 %v2878_v53  ;;  %2592 = vmatpush3.bf16.msra.mxu1 %v2879_v54  ;;  %v2941_v53 = vld [vmem:[#allocation6 + $0x38] sm:$0xff]   ;;  %v2942_v54 = vld [vmem:[#allocation8] sm:$0xff]  }
 0x126   : > { %2573 = vmatprep.subr.bf16.mxu0 %v2880_v55  ;;  %2593 = vmatprep.subr.bf16.mxu1 %v2881_v56  ;;  %v2943_v55 = vld [vmem:[#allocation8 + $0x8] sm:$0xff]   ;;  %v2944_v56 = vld [vmem:[#allocation8 + $0x10] sm:$0xff]  }
 0x129   : > { %2574 = vmatpush3.bf16.msra.mxu0 %v2882_v57  ;;  %2594 = vmatpush3.bf16.msra.mxu1 %v2883_v58  ;;  %v2945_v57 = vld [vmem:[#allocation8 + $0x18] sm:$0xff]  }
 0x12a   : > { %2575 = vmatprep.subr.bf16.mxu0 %v2884_v60  ;;  %2595 = vmatprep.subr.bf16.mxu1 %v2885_v62 }
 0x12d   : > { %2576 = vmatpush3.bf16.msra.mxu0 %v2886_v63  ;;  %2596 = vmatpush3.bf16.msra.mxu1 %v2887_v1 }
 0x12e   : > { %2577 = vmatprep.subr.bf16.mxu0 %v2888_v2  ;;  %2597 = vmatprep.subr.bf16.mxu1 %v2889_v3 }
 0x131   : > { %2578 = vmatpush3.bf16.msra.mxu0 %v2890_v0  ;;  %2598 = vmatpush3.bf16.msra.mxu1 %v2891_v4 }
 0x132   : > { %2579 = vmatprep.subr.bf16.mxu0 %v2892_v5  ;;  %2599 = vmatprep.subr.bf16.mxu1 %v2893_v7 }
 0x135   : > { %2580 = vmatpush3.bf16.msra.mxu0 %v2894_v8  ;;  %2600 = vmatpush3.bf16.msra.mxu1 %v2895_v9 }
 0x136   : > { %2581 = vmatprep.subr.bf16.mxu0 %v2896_v10  ;;  %2601 = vmatprep.subr.bf16.mxu1 %v2897_v11 }
 0x139   : > { %2582 = vmatpush3.bf16.msra.mxu0 %v2898_v12  ;;  %2602 = vmatpush3.bf16.msra.mxu1 %v2899_v13 }
 0x13a   : > { %2603 = vmatprep.subr.bf16.mxu1 %v2900_v14  ;;  %2611 = vmatprep.subr.bf16.mxu0 %v2901_v15 }
 0x13c   : > { %2394 = vmatmul.mubr.msk.bf16.vlgmr.msra.gmra.mrb[8].mxu0 %vm2393_vm9, %v3135_v6  ;;  %vm1890_vm9 = vcmask 1047559  }
 0x13d   : > { %2604 = vmatpush3.bf16.msra.mxu1 %v2902_v16  ;;  %2612 = vmatpush3.bf16.msra.mxu0 %v2903_v17 }
 0x13e   : > { %2432 = vmatprep.mubr.msk.bf16.mxu0 %vm2431_vm11, %v3135_v6  ;;  %2613 = vmatprep.subr.bf16.mxu0 %v2904_v19 }
 0x13f   : > { %2633 = vmatprep.subr.bf16.mxu1 %v2905_v20 }
 0x140   : > { %2414 = vmatmul.mubr.msk.bf16.vlgmr.msra.gmra.mrb[8].mxu1 %vm2413_vm12, %v3135_v6 }
 0x141   : > { %2614 = vmatpush3.bf16.msra.mxu0 %v2906_v21  ;;  %2634 = vmatpush3.bf16.msra.mxu1 %v2907_v23 }
 0x142   : > { %2452 = vmatprep.mubr.msk.bf16.mxu1 %vm2451_vm13, %v3135_v6  ;;  %2615 = vmatprep.subr.bf16.mxu0 %v2908_v24 }
 0x143   : > { %2635 = vmatprep.subr.bf16.mxu1 %v2909_v25 }
 0x145   : > { %2616 = vmatpush3.bf16.msra.mxu0 %v2910_v26  ;;  %2636 = vmatpush3.bf16.msra.mxu1 %v2911_v27 }
 0x146   : > { %2617 = vmatprep.subr.bf16.mxu0 %v2912_v28  ;;  %2637 = vmatprep.subr.bf16.mxu1 %v2913_v29 }
 0x149   : > { %2618 = vmatpush3.bf16.msra.mxu0 %v2914_v61  ;;  %2638 = vmatpush3.bf16.msra.mxu1 %v2915_v30 }
 0x14a   : > { %2619 = vmatprep.subr.bf16.mxu0 %v2916_v31  ;;  %2639 = vmatprep.subr.bf16.mxu1 %v2917_v32 }
 0x14d   : > { %2620 = vmatpush3.bf16.msra.mxu0 %v2918_v33  ;;  %2640 = vmatpush3.bf16.msra.mxu1 %v2919_v34 }
 0x14e   : > { %2621 = vmatprep.subr.bf16.mxu0 %v2920_v35  ;;  %2641 = vmatprep.subr.bf16.mxu1 %v2921_v36 }
 0x151   : > { %2622 = vmatpush3.bf16.msra.mxu0 %v2922_v37  ;;  %2642 = vmatpush3.bf16.msra.mxu1 %v2923_v38 }
 0x152   : > { %2623 = vmatprep.subr.bf16.mxu0 %v2924_v39  ;;  %2643 = vmatprep.subr.bf16.mxu1 %v2925_v40 }
 0x155   : > { %2624 = vmatpush3.bf16.msra.mxu0 %v2926_v41  ;;  %2644 = vmatpush3.bf16.msra.mxu1 %v2927_v42 }
 0x156   : > { %2625 = vmatprep.subr.bf16.mxu0 %v2928_v43  ;;  %2645 = vmatprep.subr.bf16.mxu1 %v2929_v44 }
 0x159   : > { %2626 = vmatpush3.bf16.msra.mxu0 %v2930_v45  ;;  %2646 = vmatpush3.bf16.msra.mxu1 %v2931_v46 }
 0x15a   : > { %2647 = vmatprep.subr.bf16.mxu1 %v2932_v47  ;;  %2673 = vmatprep.subr.bf16.mxu0 %v3136_v50 }
 0x15c   : > { %2434 = vmatmul.mubr.msk.bf16.vlgmr.msra.gmra.mrb[12].mxu0 %vm2433_vm15, %v3135_v6 }
 0x15d   : > { %2648 = vmatpush3.bf16.msra.mxu1 %v2933_v48  ;;  %2674 = vmatpush3.bf16.msra.mxu0 %v2934_v49 }
 0x15e   : > { %2693 = vmatprep.subr.bf16.mxu1 %v3136_v50  ;;  %2675 = vmatprep.subr.bf16.mxu0 %v3136_v50 }
 0x15f   : > { %2689 = vmatprep.mubr.msk.bf16.mxu0 %vm3137_vm2, %v3136_v50 }
 0x160   : > { %2454 = vmatmul.mubr.msk.bf16.vlgmr.msra.gmra.mrb[12].mxu1 %vm2453_vm1, %v3135_v6  ;;  %v2938_v6 = vld [vmem:[#allocation6 + $0x20] sm:$0xff]  }
 0x161   : > { %2676 = vmatpush3.bf16.msra.mxu0 %v2935_v18  ;;  %2709 = vmatprep.mubr.msk.bf16.mxu1 %vm3137_vm2, %v3136_v50 }
 0x162   : > { %2677 = vmatprep.subr.bf16.mxu0 %v3136_v50  ;;  %2694 = vmatpush3.bf16.msra.mxu1 %v2942_v54  ;;  %v2948_v54 = vld [vmem:[#allocation8 + $0x30] sm:$0xff]  }
 0x163   : > { %2695 = vmatprep.subr.bf16.mxu1 %v3136_v50 }
 0x165   : > { %2678 = vmatpush3.bf16.msra.mxu0 %v2936_v51  ;;  %v1908_v51 = vpop.permute.xlu0 %1907 }
 0x166   : > { %2679 = vmatprep.subr.bf16.mxu0 %v3136_v50  ;;  %2696 = vmatpush3.bf16.msra.mxu1 %v2943_v55  ;;  %v2949_v55 = vld [vmem:[#allocation8 + $0x38] sm:$0xff]  }
 0x167   : > { %2697 = vmatprep.subr.bf16.mxu1 %v3136_v50 }
 0x169   : > { %2680 = vmatpush3.bf16.msra.mxu0 %v2937_v59 }
 0x16a   : > { %2681 = vmatprep.subr.bf16.mxu0 %v3136_v50  ;;  %2698 = vmatpush3.bf16.msra.mxu1 %v2944_v56  ;;  %v2455_v56 = vld [vmem:[%s3690_s3] ss:$0 sm:$0xff] }
 0x16b   : > { %2699 = vmatprep.subr.bf16.mxu1 %v3136_v50 }
 0x16d   : > { %2682 = vmatpush3.bf16.msra.mxu0 %v2938_v6 }
 0x16e   : > { %2683 = vmatprep.subr.bf16.mxu0 %v3136_v50  ;;  %2700 = vmatpush3.bf16.msra.mxu1 %v2945_v57 }
 0x16f   : > { %2701 = vmatprep.subr.bf16.mxu1 %v3136_v50 }
 0x171   : > { %2684 = vmatpush3.bf16.msra.mxu0 %v2939_v22 }
 0x172   : > { %2685 = vmatprep.subr.bf16.mxu0 %v3136_v50 }
 0x175   : > { %2686 = vmatpush3.bf16.msra.mxu0 %v2940_v52  ;;  %v2946_v52 = vld [vmem:[#allocation8 + $0x20] sm:$0xff]  }
 0x176   : > { %2687 = vmatprep.subr.bf16.mxu0 %v3136_v50  ;;  %2702 = vmatpush3.bf16.msra.mxu1 %v2946_v52 }
 0x177   : > { %2703 = vmatprep.subr.bf16.mxu1 %v3136_v50 }
 0x179   : > { %2688 = vmatpush3.bf16.msra.mxu0 %v2941_v53  ;;  %v2947_v53 = vld [vmem:[#allocation8 + $0x28] sm:$0xff]  }
 0x17a   : > { %2704 = vmatpush3.bf16.msra.mxu1 %v2947_v53 }
 0x17b   : > { %2705 = vmatprep.subr.bf16.mxu1 %v3136_v50 }
 0x17e   : > { %2706 = vmatpush3.bf16.msra.mxu1 %v2948_v54 }
 0x17f   : > { %2707 = vmatprep.subr.bf16.mxu1 %v3136_v50  ;;  %v2464_v50 = vld [vmem:[%s3692_s5] ss:$0 sm:$0xff] }
 0x182   : > { %2708 = vmatpush3.bf16.msra.mxu1 %v2949_v55 }
 0x1cf   : > { %v2495_v58 = vpop.f32.mrb[0].mxu0 }
 0x1d0   : > { %v2496_v60 = vpop.f32.mrb[1].mxu0 }
 0x1d1   : > { %v2497_v62 = vadd.f32 %v2496_v60, %v2495_v58  ;;  %v2498_v63 = vpop.f32.mrb[2].mxu0 }
 0x1d2   : > { %v2499_v1 = vpop.f32.mrb[3].mxu0 }
 0x1d3   : > { %v2517_v2 = vpop.f32.mrb[0].mxu1 }
 0x1d4   : > { %v2518_v3 = vpop.f32.mrb[1].mxu1 }
 0x1d5   : > { %v2519_v0 = vadd.f32 %v2518_v3, %v2517_v2  ;;  %v2520_v4 = vpop.f32.mrb[2].mxu1 }
 0x1d6   : > { %v2521_v5 = vpop.f32.mrb[3].mxu1 }
 0x1d7   : > { %v1871_v7 = vrot.slane %v2519_v0, 7 }
 0x1d9   : > { %v1873_v8 = vsel %vm1872_vm3, %v1871_v7, %v2497_v62 }
 0x1ef   : > { %v2539_v9 = vpop.f32.mrb[4].mxu0 }
 0x1f0   : > { %v2540_v10 = vpop.f32.mrb[5].mxu0 }
 0x1f1   : > { %v2541_v11 = vadd.f32 %v2540_v10, %v2539_v9  ;;  %v2542_v12 = vpop.f32.mrb[6].mxu0 }
 0x1f2   : > { %v2543_v13 = vpop.f32.mrb[7].mxu0 }
 0x1f3   : > { %v1874_v14 = vrot.slane %v2541_v11, 6  ;;  %v2561_v15 = vpop.f32.mrb[4].mxu1 }
 0x1f4   : > { %v2562_v16 = vpop.f32.mrb[5].mxu1 }
 0x1f5   : > { %v1876_v17 = vsel %vm1875_vm4, %v1874_v14, %v1873_v8  ;;  %v2563_v19 = vadd.f32 %v2562_v16, %v2561_v15  ;;  %v2564_v20 = vpop.f32.mrb[6].mxu1 }
 0x1f6   : > { %v2565_v21 = vpop.f32.mrb[7].mxu1 }
 0x1f7   : > { %v1877_v23 = vrot.slane %v2563_v19, 5 }
 0x1f9   : > { %v1879_v24 = vsel %vm1878_vm5, %v1877_v23, %v1876_v17 }
 0x20f   : > { %v2583_v25 = vpop.f32.mrb[8].mxu0 }
 0x210   : > { %v2584_v26 = vpop.f32.mrb[9].mxu0 }
 0x211   : > { %v2585_v27 = vadd.f32 %v2584_v26, %v2583_v25  ;;  %v2586_v28 = vpop.f32.mrb[10].mxu0 }
 0x212   : > { %v2587_v29 = vpop.f32.mrb[11].mxu0 }
 0x213   : > { %v1880_v61 = vrot.slane %v2585_v27, 4  ;;  %v2605_v30 = vpop.f32.mrb[8].mxu1 }
 0x214   : > { %v2606_v31 = vpop.f32.mrb[9].mxu1 }
 0x215   : > { %v1882_v32 = vsel %vm1881_vm6, %v1880_v61, %v1879_v24  ;;  %v2607_v33 = vadd.f32 %v2606_v31, %v2605_v30  ;;  %v2608_v34 = vpop.f32.mrb[10].mxu1 }
 0x216   : > { %v2609_v35 = vpop.f32.mrb[11].mxu1 }
 0x217   : > { %v1883_v36 = vrot.slane %v2607_v33, 3 }
 0x219   : > { %v1885_v37 = vsel %vm1884_vm7, %v1883_v36, %v1882_v32 }
 0x22f   : > { %v2627_v38 = vpop.f32.mrb[12].mxu0 }
 0x230   : > { %v2628_v39 = vpop.f32.mrb[13].mxu0 }
 0x231   : > { %v2629_v40 = vadd.f32 %v2628_v39, %v2627_v38  ;;  %v2630_v41 = vpop.f32.mrb[14].mxu0 }
 0x232   : > { %v2631_v42 = vpop.f32.mrb[15].mxu0 }
 0x233   : > { %v1886_v43 = vrot.slane %v2629_v40, 2  ;;  %v2649_v44 = vpop.f32.mrb[12].mxu1 }
 0x234   : > { %v2650_v45 = vpop.f32.mrb[13].mxu1 }
 0x235   : > { %v1888_v46 = vsel %vm1887_vm8, %v1886_v43, %v1885_v37  ;;  %v2651_v47 = vadd.f32 %v2650_v45, %v2649_v44  ;;  %v2652_v48 = vpop.f32.mrb[14].mxu1 }
 0x236   : > { %v2653_v49 = vpop.f32.mrb[15].mxu1 }
 0x237   : > { %v1889_v18 = vrot.slane %v2651_v47, 1 }
 0x239   : > { %v1891_v59 = vsel %vm1890_vm9, %v1889_v18, %v1888_v46 }
 0x23a   : > { %v1910_v6 = vmul.f32 %v1908_v51, %v1891_v59 }
 0x23c   : > { %v1911_v22 = vpack.c.bf16 %v1910_v6, %v1910_v6 }
 0x23e   : > { %2690 = vmatmul.mubr.bf16.vlgmr.msra.gmra.mrb[16].mxu0 %v1911_v22 }
 0x311   : > { %v2017_v57 = vpop.f32.mrb[16].mxu0 }
 0x312   : > { %v2018_v58 = vadd.f32 %v2455_v56, %v2017_v57  ;;  %v2691_v60 = vpop.f32.mrb[17].mxu0 }
 0x313   : > { %v2020_v62 = vpop.f32.mrb[18].mxu0 }
 0x314   : > { %2952 = vtanh.f32 %v2018_v58  ;;  %v2692_v63 = vpop.f32.mrb[19].mxu0 }
 0x31e   : > { %v2953_v1 = vpop.eup %2952 }
 0x31f   : > { %v2024_v2 = vpack.c.bf16 %v2953_v1, %v2953_v1 }
 0x321   : > { %2710 = vmatmul.mubr.bf16.vlgmr.msra.gmra.mrb[16].mxu1 %v2024_v2 }
 0x3f4   : > { %v2130_v3 = vpop.f32.mrb[16].mxu1 }
 0x3f5   : > { %v2131_v0 = vadd.f32 %v2464_v50, %v2130_v3  ;;  %v2711_v4 = vpop.f32.mrb[17].mxu1 }
 0x3f6   : > { %v2133_v5 = vpop.f32.mrb[18].mxu1 }
 0x3f7   : > { %2136 = vst [vmem:[%s328_s30] sm:$0xff] %v2131_v0  ;;  %v2712_v7 = vpop.f32.mrb[19].mxu1 }
 0x3f8   : > { %3053 = shalt.err (!%p3050_p0)
}
 0x3f9   : > { %s3054_s28 = scalar_lea.hbm %s3638_s7, 128  ;;  %s3058_s20 = scalar_lea.hbm %s3693_s6, 256 }
 0x3fa   : > { %p3055_p4 = scmp.ne.s32.totalorder %s3638_s7, %s3054_s28  ;;  %p3059_p7 = scmp.lt.u32.totalorder %s3638_s7, %s3693_s6 }
 0x3fb   : > { %p3060_p2 = scmp.lt.u32.totalorder %s3058_s20, %s3054_s28  ;;  %p3062_p12 = scmp.lt.u32.totalorder %s3054_s28, %s3638_s7 }
 0x3fc   : > { %p3056_p13 = pnand %p3055_p4, %p3712_p1 }
 0x3fd   : > { %p3061_p8 = por %p3060_p2, %p3059_p7 }
 0x3fe   : > { %p3057_p6 = pneg %p3056_p13 }
 0x3ff   : > { %p3063_p10 = por %p3062_p12, %p3061_p8 }
 0x401   : > { %p3064_p3 = pnand %p3063_p10, %p3057_p6 }
 0x403   : > { %3067 = shalt.err (!%p3064_p3)
}
 0x404   : > { %2723 = dma.vmem_to_hbm [thread:$0]  (%p3712_p1), %s3640_s19, 128, %s3638_s7, %s2138_s29  }
 0x405 PF: > { %s3713_s30 = sld [smem:[#allocation13_spill]]  ;;  %s2163_s14 = sand.u32 1, %s3106_s21  }
 0x406   : > { %p3715_p9 = scmp.ge.s32.totalorder %s3126_s26, 2  ;;  %s2164_s9 = scalar_lea.sflag [#allocation5], %s2163_s14 }
 0x40b   : > { %p3714_p5 = scmp.ne.s32.totalorder %s3713_s30, 0 }
 0x40d   : > { %p2737_p11 = pnand %p3715_p9, %p3714_p5 }
 0x40f   : > { %3101 = dma.done.wait (!%p2737_p11), %s2164_s9, 128  }
 0x410   : > { %3103 = vsyncadd (!%p2737_p11), %s2164_s9, 4294967168  ;;  %s23_s26 = sadd.s32 1, %s3126_s26   ;;  %s3716_s21 = smov %s3110_s22 }
 0x411   : > { %p20_p0 = scmp.ge.s32.totalorder %s23_s26, 4   ;;  %s3717_s22 = smov %s3114_s23 }
 0x412   : > { %s3718_s23 = smov %s3322_s27  ;;  %s3719_s24 = smov %s3122_s25 }
 0x413   : > { %s3720_s25 = smov %s3722_s12  ;;  %22 = sbr.rel (!%p20_p0) target bundleno = 7 (0x7), region = 108 }
 0x41a   :  { %2169 = vsyncpa [#allocation4], 1 }
 0x41b   :  { %2171 = vsyncpa [#allocation4 + $0x1], 1 }
 0x41c   :  { %2172 = vsyncpa [#allocation7], 1 }
 0x41d   :  { %2173 = vsyncpa [#allocation5], 1 }
 0x41e   :  { %2175 = vsyncpa [#allocation5 + $0x1], 1 }

</bundles_post_ra>
